<compile_context>
chip_gen: v6e
topology: v6e:2x2x1
jax: 0.10.0
libtpu: 0.0.40
codegen_flags: <defaults>
</compile_context>

<pallas_src>
import jax
import jax.numpy as jnp
from jax.experimental import pallas as pl
from jax.experimental.pallas import tpu as pltpu

_SUBLANE = 8
_LANE = 128


def _round_up(n, m):
    return (n + m - 1) // m * m


def splatter_kernel(filt_ref, bias_ref, x_ref, out_ref, xpad_ref):
    # filt_ref : SMEM (fh, fw)   — scalar-indexed taps
    # bias_ref : SMEM (1, 1)
    # x_ref    : VMEM (H, W)     — raw input image (no pre-padding)
    # out_ref  : VMEM (RO, 128)  — lane-dense output slab; valid region [:H+fh-1, :W+fw-1]
    # xpad_ref : VMEM scratch    — zero-padded image, x placed at aligned (r0, c0)
    fh, fw = filt_ref.shape
    h, w = x_ref.shape
    ro, lo = out_ref.shape

    # x's placement inside the scratch: aligned to the (8,128) tile grid so the
    # fill store needs no sublane/lane rotation, while still leaving >= (fh-1, fw-1)
    # rows/lanes of zeros above/left of it for the tap slices below.
    r0 = _round_up(fh - 1, _SUBLANE)
    c0 = _round_up(fw - 1, _LANE)

    # Fused zero-padding: zero the scratch, drop the image in.
    xpad_ref[...] = jnp.zeros_like(xpad_ref)
    xpad_ref[r0:r0 + h, c0:c0 + w] = x_ref[...]

    # out[oy, ox] = bias + sum_{fy,fx} x[oy-fy, ox-fx] * filt[fy, fx]
    #             = bias + sum_{fy,fx} xpad[oy + r0 - fy, ox + c0 - fx] * filt[fy, fx]
    # fh, fw are tiny & static -> fully unrolled taps; every tap is a static,
    # in-bounds slice of the scratch (out-of-range input pixels read zeros).
    acc = None
    for fy in range(fh):
        for fx in range(fw):
            tap = xpad_ref[r0 - fy:r0 - fy + ro, c0 - fx:c0 - fx + lo]
            term = filt_ref[fy, fx] * tap
            # Fold the bias into the first tap instead of a separate broadcast add.
            acc = (term + bias_ref[0, 0]) if acc is None else (acc + term)

    out_ref[...] = acc.astype(out_ref.dtype)


@jax.jit
def splatter(x, filt, bias):
    """Pallas implementation of Splatter.forward (full 'splat' conv + scalar bias)."""
    h, w = x.shape
    fh, fw = filt.shape
    ho, wo = h + fh - 1, w + fw - 1
    assert wo <= _LANE, "output width must fit in one 128-lane tile"

    ro = _round_up(ho, _SUBLANE)          # lane-dense output slab rows (e.g. 24)
    lo = _LANE                            # lane-dense output slab lanes (128)
    r0 = _round_up(fh - 1, _SUBLANE)      # aligned placement of x in the scratch
    c0 = _round_up(fw - 1, _LANE)

    out_slab = pl.pallas_call(
        splatter_kernel,
        out_shape=jax.ShapeDtypeStruct((ro, lo), jnp.float32),
        grid=(1,),
        in_specs=[
            pl.BlockSpec(memory_space=pltpu.MemorySpace.SMEM),   # filter (fh, fw)
            pl.BlockSpec(memory_space=pltpu.MemorySpace.SMEM),   # bias   (1, 1)
            pl.BlockSpec((h, w), lambda i: (0, 0)),              # raw input image
        ],
        out_specs=pl.BlockSpec((ro, lo), lambda i: (0, 0)),
        scratch_shapes=[pltpu.VMEM((r0 + ro, c0 + lo), jnp.float32)],
    )(filt.astype(jnp.float32), bias.astype(jnp.float32), x.astype(jnp.float32))

    # Slice the valid region out of the lane-dense slab.
    return out_slab[:ho, :wo]


def splatter_ref(x, filt, bias):
    """Pure-JAX reference of the same splat semantics."""
    h, w = x.shape
    fh, fw = filt.shape
    out = jnp.zeros((h + fh - 1, w + fw - 1), jnp.float32)
    for fy in range(fh):
        for fx in range(fw):
            out = out.at[fy:fy + h, fx:fx + w].add(x * filt[fy, fx])
    return out + bias[0, 0]


if __name__ == "__main__":
    key = jax.random.PRNGKey(0)
    kx, kf, kb = jax.random.split(key, 3)

    # Module __init__: filter = randn(filter_width, filter_height), bias = randn(1, 1)
    filter_width, filter_height = 3, 3
    x = jax.random.normal(kx, (16, 16), dtype=jnp.float32)           # input, as in the torch test
    filt = jax.random.normal(kf, (filter_width, filter_height), dtype=jnp.float32)
    bias = jax.random.normal(kb, (1, 1), dtype=jnp.float32)

    out = jax.block_until_ready(splatter(x, filt, bias))
    ref = jax.block_until_ready(splatter_ref(x, filt, bias))

    assert out.shape == (16 + filter_width - 1, 16 + filter_height - 1)
    assert jnp.allclose(out, ref, atol=1e-5, rtol=1e-5), "mismatch vs reference"

    # TODO(synk): backward (splatter_backward_input/filter, grad_bias) not implemented — forward only.
    print("KERNEL_OK")
</pallas_src>

<mosaic_0001>
module attributes {stable_mosaic.version = 11 : i64} {
  func.func @splatter_kernel(%arg0: i32, %arg1: memref<3x3xf32, #tpu.memory_space<smem>>, %arg2: memref<1x1xf32, #tpu.memory_space<smem>>, %arg3: memref<16x16xf32, #tpu.memory_space<vmem>>, %arg4: memref<24x128xf32, #tpu.memory_space<vmem>>, %arg5: memref<32x256xf32, #tpu.memory_space<vmem>>) attributes {dimension_semantics = [#tpu.dimension_semantics<arbitrary>], iteration_bounds = array<i64: 1>, scalar_prefetch = 0 : i64, scratch_operands = 1 : i64, tpu.core_type = #tpu.core_type<tc>, window_params = [{transform_indices = @transform_0, window_bounds = array<i64: 3, 3>}, {transform_indices = @transform_1, window_bounds = array<i64: 1, 1>}, {pipeline_mode = #tpu.pipeline_mode<synchronous>, transform_indices = @transform_2, window_bounds = array<i64: 16, 16>}, {pipeline_mode = #tpu.pipeline_mode<synchronous>, transform_indices = @transform_3, window_bounds = array<i64: 24, 128>}]} {
    %cst = arith.constant 0.000000e+00 : f32
    %0 = vector.broadcast %cst : f32 to vector<32x256xf32>
    %c0 = arith.constant 0 : index
    %c0_0 = arith.constant 0 : index
    %1 = vector.load %arg5[%c0, %c0_0] : memref<32x256xf32, #tpu.memory_space<vmem>>, vector<32x256xf32>
    tpu.vector_store %arg5[%c0, %c0_0], %0 {strides = array<i32>} : memref<32x256xf32, #tpu.memory_space<vmem>>, vector<32x256xf32>,
    %c0_1 = arith.constant 0 : index
    %c0_2 = arith.constant 0 : index
    %2 = vector.load %arg3[%c0_1, %c0_2] : memref<16x16xf32, #tpu.memory_space<vmem>>, vector<16x16xf32>
    %c8 = arith.constant 8 : index
    %c128 = arith.constant 128 : index
    %3 = vector.load %arg5[%c8, %c128] : memref<32x256xf32, #tpu.memory_space<vmem>>, vector<16x16xf32>
    tpu.vector_store %arg5[%c8, %c128], %2 {strides = array<i32>} : memref<32x256xf32, #tpu.memory_space<vmem>>, vector<16x16xf32>,
    %c8_3 = arith.constant 8 : index
    %c128_4 = arith.constant 128 : index
    %4 = vector.load %arg5[%c8_3, %c128_4] : memref<32x256xf32, #tpu.memory_space<vmem>>, vector<24x128xf32>
    %c0_5 = arith.constant 0 : index
    %c0_6 = arith.constant 0 : index
    %5 = memref.load %arg1[%c0_5, %c0_6] : memref<3x3xf32, #tpu.memory_space<smem>>
    %6 = vector.broadcast %5 : f32 to vector<24x128xf32>
    %7 = arith.mulf %6, %4 : vector<24x128xf32>
    %c0_7 = arith.constant 0 : index
    %c0_8 = arith.constant 0 : index
    %8 = memref.load %arg2[%c0_7, %c0_8] : memref<1x1xf32, #tpu.memory_space<smem>>
    %9 = vector.broadcast %8 : f32 to vector<24x128xf32>
    %10 = arith.addf %7, %9 : vector<24x128xf32>
    %c8_9 = arith.constant 8 : index
    %c127 = arith.constant 127 : index
    %11 = vector.load %arg5[%c8_9, %c127] : memref<32x256xf32, #tpu.memory_space<vmem>>, vector<24x128xf32>
    %c0_10 = arith.constant 0 : index
    %c1 = arith.constant 1 : index
    %12 = memref.load %arg1[%c0_10, %c1] : memref<3x3xf32, #tpu.memory_space<smem>>
    %13 = vector.broadcast %12 : f32 to vector<24x128xf32>
    %14 = arith.mulf %13, %11 : vector<24x128xf32>
    %15 = arith.addf %10, %14 : vector<24x128xf32>
    %c8_11 = arith.constant 8 : index
    %c126 = arith.constant 126 : index
    %16 = vector.load %arg5[%c8_11, %c126] : memref<32x256xf32, #tpu.memory_space<vmem>>, vector<24x128xf32>
    %c0_12 = arith.constant 0 : index
    %c2 = arith.constant 2 : index
    %17 = memref.load %arg1[%c0_12, %c2] : memref<3x3xf32, #tpu.memory_space<smem>>
    %18 = vector.broadcast %17 : f32 to vector<24x128xf32>
    %19 = arith.mulf %18, %16 : vector<24x128xf32>
    %20 = arith.addf %15, %19 : vector<24x128xf32>
    %c7 = arith.constant 7 : index
    %c128_13 = arith.constant 128 : index
    %21 = vector.load %arg5[%c7, %c128_13] : memref<32x256xf32, #tpu.memory_space<vmem>>, vector<24x128xf32>
    %c1_14 = arith.constant 1 : index
    %c0_15 = arith.constant 0 : index
    %22 = memref.load %arg1[%c1_14, %c0_15] : memref<3x3xf32, #tpu.memory_space<smem>>
    %23 = vector.broadcast %22 : f32 to vector<24x128xf32>
    %24 = arith.mulf %23, %21 : vector<24x128xf32>
    %25 = arith.addf %20, %24 : vector<24x128xf32>
    %c7_16 = arith.constant 7 : index
    %c127_17 = arith.constant 127 : index
    %26 = vector.load %arg5[%c7_16, %c127_17] : memref<32x256xf32, #tpu.memory_space<vmem>>, vector<24x128xf32>
    %c1_18 = arith.constant 1 : index
    %c1_19 = arith.constant 1 : index
    %27 = memref.load %arg1[%c1_18, %c1_19] : memref<3x3xf32, #tpu.memory_space<smem>>
    %28 = vector.broadcast %27 : f32 to vector<24x128xf32>
    %29 = arith.mulf %28, %26 : vector<24x128xf32>
    %30 = arith.addf %25, %29 : vector<24x128xf32>
    %c7_20 = arith.constant 7 : index
    %c126_21 = arith.constant 126 : index
    %31 = vector.load %arg5[%c7_20, %c126_21] : memref<32x256xf32, #tpu.memory_space<vmem>>, vector<24x128xf32>
    %c1_22 = arith.constant 1 : index
    %c2_23 = arith.constant 2 : index
    %32 = memref.load %arg1[%c1_22, %c2_23] : memref<3x3xf32, #tpu.memory_space<smem>>
    %33 = vector.broadcast %32 : f32 to vector<24x128xf32>
    %34 = arith.mulf %33, %31 : vector<24x128xf32>
    %35 = arith.addf %30, %34 : vector<24x128xf32>
    %c6 = arith.constant 6 : index
    %c128_24 = arith.constant 128 : index
    %36 = vector.load %arg5[%c6, %c128_24] : memref<32x256xf32, #tpu.memory_space<vmem>>, vector<24x128xf32>
    %c2_25 = arith.constant 2 : index
    %c0_26 = arith.constant 0 : index
    %37 = memref.load %arg1[%c2_25, %c0_26] : memref<3x3xf32, #tpu.memory_space<smem>>
    %38 = vector.broadcast %37 : f32 to vector<24x128xf32>
    %39 = arith.mulf %38, %36 : vector<24x128xf32>
    %40 = arith.addf %35, %39 : vector<24x128xf32>
    %c6_27 = arith.constant 6 : index
    %c127_28 = arith.constant 127 : index
    %41 = vector.load %arg5[%c6_27, %c127_28] : memref<32x256xf32, #tpu.memory_space<vmem>>, vector<24x128xf32>
    %c2_29 = arith.constant 2 : index
    %c1_30 = arith.constant 1 : index
    %42 = memref.load %arg1[%c2_29, %c1_30] : memref<3x3xf32, #tpu.memory_space<smem>>
    %43 = vector.broadcast %42 : f32 to vector<24x128xf32>
    %44 = arith.mulf %43, %41 : vector<24x128xf32>
    %45 = arith.addf %40, %44 : vector<24x128xf32>
    %c6_31 = arith.constant 6 : index
    %c126_32 = arith.constant 126 : index
    %46 = vector.load %arg5[%c6_31, %c126_32] : memref<32x256xf32, #tpu.memory_space<vmem>>, vector<24x128xf32>
    %c2_33 = arith.constant 2 : index
    %c2_34 = arith.constant 2 : index
    %47 = memref.load %arg1[%c2_33, %c2_34] : memref<3x3xf32, #tpu.memory_space<smem>>
    %48 = vector.broadcast %47 : f32 to vector<24x128xf32>
    %49 = arith.mulf %48, %46 : vector<24x128xf32>
    %50 = arith.addf %45, %49 : vector<24x128xf32>
    %c0_35 = arith.constant 0 : index
    %c0_36 = arith.constant 0 : index
    %51 = vector.load %arg4[%c0_35, %c0_36] : memref<24x128xf32, #tpu.memory_space<vmem>>, vector<24x128xf32>
    tpu.vector_store %arg4[%c0_35, %c0_36], %50 {strides = array<i32>} : memref<24x128xf32, #tpu.memory_space<vmem>>, vector<24x128xf32>,
    return
  }
  func.func @transform_0(%arg0: i32) -> (i32, i32) {
    %c0_i32 = arith.constant 0 : i32
    %c0_i32_0 = arith.constant 0 : i32
    %c0_i32_1 = arith.constant 0 : i32
    return %c0_i32, %c0_i32_0 : i32, i32
  }
  func.func @transform_1(%arg0: i32) -> (i32, i32) {
    %c0_i32 = arith.constant 0 : i32
    %c0_i32_0 = arith.constant 0 : i32
    %c0_i32_1 = arith.constant 0 : i32
    return %c0_i32, %c0_i32_0 : i32, i32
  }
  func.func @transform_2(%arg0: i32) -> (i32, i32) {
    %c0_i32 = arith.constant 0 : i32
    %c0_i32_0 = arith.constant 0 : i32
    %c0_i32_1 = arith.constant 0 : i32
    return %c0_i32, %c0_i32_0 : i32, i32
  }
  func.func @transform_3(%arg0: i32) -> (i32, i32) {
    %c0_i32 = arith.constant 0 : i32
    %c0_i32_0 = arith.constant 0 : i32
    %c0_i32_1 = arith.constant 0 : i32
    return %c0_i32, %c0_i32_0 : i32, i32
  }
}

</mosaic_0001>

<bundles_post_ra>
// kernel: splatter.1
= control target key start
LH: loop header
LB: loop body
LE: loop exit
PB: predicated region body
PF: predicated region fallthrough
CT: control target
= control target key end

     0   :  { %9 = vsyncpa [#allocation7], 0  ;;  %s698_s0 = inlined_call_operand.hbm [shape: f32[3,3], index: 0, kind: input, shape index: {}]   ;;  %s699_s1 = inlined_call_operand.<no memory space> [shape: f32[1,1], index: 1, kind: input, shape index: {}]   ;;  %s700_s2 = inlined_call_operand.hbm [shape: f32[16,16], index: 2, kind: input, shape index: {}]   ;;  %s701_s3 = inlined_call_operand.hbm [shape: f32[24,128], index: 3, kind: output, shape index: {}]  }
   0x1   :  { %10 = vsyncpa [#allocation5], 0 }
   0x2   :  { %11 = vsyncpa [#allocation6], 0  ;;  %s501_s12 = smov [#allocation4]   ;;  %s502_s15 = smov [#allocation8]  }
   0x3   :  { %19 = dma.hbm_to_smem %s698_s0, 64, %s501_s12, [#allocation7]  }
   0x4   :  { %s27_s16 = sshll.u32 %s502_s15, 4  ;;  %s28_s16 = int_to_ptr.vmem [resolvable:$true] %s27_s16 }
   0x5   :  { %s463_s17 = scalar_lea.vmem %s28_s16, 256  ;;  %p468_p1 = scmp.lt.s32.totalorder %s28_s16, %s28_s16 }
   0x6   :  { %p464_p0 = scmp.ne.s32.totalorder %s28_s16, %s463_s17  ;;  %p469_p2 = scmp.lt.s32.totalorder %s463_s17, %s463_s17 }
   0x8   :  { %p470_p3 = por %p469_p2, %p468_p1 }
   0xa   :  { %p471_p4 = pnand %p470_p3, %p464_p0 }
   0xc   :  { %474 = shalt.err (!%p471_p4)
}
   0xd   :  { %s503_s18 = smov 128   ;;  %s504_s19 = smov 8  }
   0xe   :  { %33 = dma.hbm_to_vmem [thread:$0]  %s700_s2, 256, %s28_s16, [#allocation5], %s503_s18, %s503_s18, %s504_s19  }
   0xf   :  { %495 = dma.done.wait [#allocation7], 64  }
  0x10   :  { %496 = vsyncadd [#allocation7], 4294967232 }
  0x11   :  { %497 = dma.done.wait [#allocation5], 256  }
  0x12   :  { %498 = vsyncadd [#allocation5], 4294967040 }
  0x13   :  { %40 = sfence }
  0x14   :  { %s431_s0 = sld [smem:[#allocation4 + $0x1]]  ;;  %v50_v0 = vld [vmem:[#allocation8 + $0x8] sm:$0xff]  ;;  %vm51_vm0 = vcmask 130048   ;;  %v505_v1 = vmov 0.0   ;;  %v49_v2 = vld [vmem:[#allocation8] sm:$0xff]  ;;  %s506_s2 = smov 1  }
  0x15   :  { %41 = vst [vmem:[#allocation2] sm:$0xff] %v505_v1  ;;  %42 = vst [vmem:[#allocation2 + $0x8] sm:$0xff] %v505_v1  ;;  %s432_s22 = sld [smem:[#allocation4 + $0x2]]  ;;  %s507_s25 = smov 2   ;;  %vm154_vm1 = vcmask 1040384   ;;  %vm288_vm2 = vcmask 1041408  }
  0x16   :  { %44 = vst [vmem:[#allocation2 + $0x18] sm:$0xff] %v505_v1  ;;  %46 = vst [vmem:[#allocation2 + $0x28] sm:$0xff] %v505_v1  ;;  %s434_s23 = sld [smem:[#allocation4 + $0x81]]  ;;  %vm96_vm3 = vcmask 7168   ;;  %vm132_vm4 = vcmask 15360  }
  0x17   :  { %47 = vst [vmem:[#allocation2 + $0x30] sm:$0xff] %v505_v1  ;;  %48 = vst [vmem:[#allocation2 + $0x38] sm:$0xff] %v505_v1  ;;  %s435_s24 = sld [smem:[#allocation4 + $0x82]] }
  0x18   :  { %53 = vst.msk [vmem:[#allocation2 + $0x28] sm:$0xff] %vm51_vm0, %v50_v0  ;;  %52 = vst.msk [vmem:[#allocation2 + $0x18] sm:$0xff] %vm51_vm0, %v49_v2  ;;  %s433_s26 = sld [smem:[#allocation4 + $0x80]] }
  0x19   :  { %s436_s27 = sld [smem:[#allocation4 + $0x100]] }
  0x1a   :  { %v71_v3 = vstv %s431_s0  ;;  %s584_s28 = sld [smem:[#allocation4 + $0x101]] }
  0x1b   :  { %v74_v4 = vmul.f32 0.0, %v71_v3  ;;  %v107_v6 = vstv %s432_s22  ;;  %s438_s29 = sld [smem:[#allocation4 + $0x102]] }
  0x1c   :  { %v108_v8 = vmul.f32 0.0, %v107_v6  ;;  %v142_v12 = vld [vmem:[#allocation2 + $0x8] sm:$0x80]  ;;  %v171_v13 = vstv %s434_s23  ;;  %v168_v14 = vld [vmem:[#allocation2] sm:$0x80]  ;;  %s57_s30 = sld [smem:[#allocation4]] }
  0x1d   :  { %88 = vrot.lane.b32.xlu1 %v74_v4, %s506_s2  ;;  %84 = vrot.lane.b32.xlu0 %v74_v4, %s506_s2  ;;  %v173_v18 = vmul.f32 %v171_v13, %v142_v12  ;;  %v172_v20 = vmul.f32 %v171_v13, %v168_v14  ;;  %v174_v21 = vmul.f32 0.0, %v171_v13  ;;  %v562_v25 = vstv %s435_s24  ;;  %v580_v46 = vld [vmem:[#allocation2 + $0x8] sm:$0xc0] }
  0x1e   :  { %v554_v16 = vld [vmem:[#allocation2 + $0x38] sm:$0x7f]  ;;  %v556_v17 = vld [vmem:[#allocation2 + $0x30] sm:$0x7f]  ;;  %v226_v31 = vmul.f32 %v562_v25, %v142_v12  ;;  %v225_v39 = vmul.f32 %v562_v25, %v168_v14  ;;  %v227_v40 = vmul.f32 0.0, %v562_v25  ;;  %v145_v43 = vstv %s433_s26 }
  0x1f   :  { %v540_v5 = vld [vmem:[#allocation2 + $0x28] sm:$0xff]  ;;  %v545_v9 = vld [vmem:[#allocation2 + $0x18] sm:$0xff]  ;;  %v179_v23 = vmul.f32 %v171_v13, %v554_v16  ;;  %v178_v24 = vmul.f32 %v171_v13, %v556_v17  ;;  %v191_v26 = vrot.slane %v173_v18, 7  ;;  %v188_v28 = vrot.slane %v172_v20, 7 }
  0x20   :  { %v75_v7 = vmul.f32 %v71_v3, %v540_v5  ;;  %v109_v10 = vmul.f32 %v107_v6, %v545_v9  ;;  %v73_v11 = vmul.f32 %v71_v3, %v545_v9  ;;  %v111_v15 = vmul.f32 %v107_v6, %v540_v5  ;;  %v594_v0 = vld [vmem:[#allocation2 + $0x38] sm:$0x3f] }
  0x21   :  { %94 = vrot.lane.b32.xlu1 %v74_v4, %s506_s2  ;;  %92 = vrot.lane.b32.xlu0 %v74_v4, %s506_s2  ;;  %v175_v19 = vmul.f32 %v171_v13, %v545_v9  ;;  %v177_v22 = vmul.f32 %v171_v13, %v540_v5  ;;  %v189_v29 = vrot.slane %v174_v21, 7  ;;  %v200_v32 = vrot.slane %v179_v23, 7 }
  0x22   :  { %v198_v33 = vrot.slane %v178_v24, 7  ;;  %v228_v34 = vmul.f32 %v562_v25, %v545_v9  ;;  %v244_v38 = vrot.slane %v226_v31, 7  ;;  %v279_v44 = vstv %s436_s27 }
  0x23   :  { %v192_v27 = vrot.slane %v175_v19, 7  ;;  %v196_v30 = vrot.slane %v177_v22, 7  ;;  %v190_v36 = vsel %vm154_vm1, %v188_v28, %v189_v29  ;;  %v146_v47 = vmul.f32 %v145_v43, %v142_v12  ;;  %v302_v19 = vld [vmem:[#allocation2] sm:$0xc0] }
  0x24   :  { %v199_v42 = vsel %vm154_vm1, %v189_v29, %v198_v33  ;;  %v245_v45 = vrot.slane %v228_v34, 7  ;;  %v147_v48 = vmul.f32 %v145_v43, %v545_v9  ;;  %v148_v49 = vmul.f32 %v145_v43, %v540_v5 }
  0x25   :  { %90 = vrot.lane.b32.xlu1 %v75_v7, %s506_s2  ;;  %120 = vrot.lane.b32.xlu0 %v108_v8, %s507_s25  ;;  %v193_v35 = vsel %vm154_vm1, %v191_v26, %v192_v27  ;;  %v197_v37 = vsel %vm154_vm1, %v192_v27, %v196_v30  ;;  %v201_v41 = vsel %vm154_vm1, %v196_v30, %v200_v32  ;;  %v155_v55 = vrot.slane %v146_v47, 7  ;;  %v303_v32 = vld [vmem:[#allocation2 + $0x30] sm:$0x3f] }
  0x26   :  { %v149_v50 = vmul.f32 %v145_v43, %v554_v16  ;;  %v280_v51 = vmul.f32 %v279_v44, %v580_v46  ;;  %v281_v52 = vmul.f32 %v279_v44, %v545_v9  ;;  %v282_v53 = vmul.f32 %v279_v44, %v540_v5 }
  0x27   :  { %v230_v54 = vmul.f32 %v562_v25, %v540_v5  ;;  %v156_v56 = vrot.slane %v147_v48, 7  ;;  %v158_v57 = vrot.slane %v148_v49, 7  ;;  %v241_v62 = vrot.slane %v225_v39, 7 }
  0x28   :  { %v160_v58 = vrot.slane %v149_v50, 7  ;;  %v289_v59 = vrot.slane %v280_v51, 6  ;;  %v290_v60 = vrot.slane %v281_v52, 6  ;;  %v292_v61 = vrot.slane %v282_v53, 6 }
  0x29   :  { %122 = vrot.lane.b32.xlu1 %v109_v10, %s507_s25  ;;  %86 = vrot.lane.b32.xlu0 %v73_v11, %s506_s2  ;;  %v242_v63 = vrot.slane %v227_v40, 7  ;;  %v597_v1 = vsel %vm154_vm1, %v155_v55, %v156_v56  ;;  %v600_v2 = vsel %vm154_vm1, %v156_v56, %v158_v57  ;;  %v283_v7 = vmul.f32 %v279_v44, %v594_v0 }
  0x2a   :  { %v603_v3 = vsel %vm154_vm1, %v158_v57, %v160_v58  ;;  %v606_v4 = vsel %vm288_vm2, %v289_v59, %v290_v60  ;;  %v609_v6 = vsel %vm288_vm2, %v290_v60, %v292_v61  ;;  %v246_v10 = vsel %vm154_vm1, %v244_v38, %v245_v45 }
  0x2b   :  { %v249_v11 = vrot.slane %v230_v54, 7  ;;  %v232_v12 = vmul.f32 %v562_v25, %v554_v16  ;;  %v243_v13 = vsel %vm154_vm1, %v241_v62, %v242_v63  ;;  %v231_v14 = vmul.f32 %v562_v25, %v556_v17 }
  0x2c   :  { %v358_v34 = vstv %s438_s29 }
  0x2d   :  { %126 = vrot.lane.b32.xlu1 %v111_v15, %s507_s25  ;;  %124 = vrot.lane.b32.xlu0 %v108_v8, %s507_s25  ;;  %v305_v15 = vstv %s584_s28  ;;  %v250_v20 = vsel %vm154_vm1, %v245_v45, %v249_v11  ;;  %v253_v21 = vrot.slane %v232_v12, 7  ;;  %v251_v16 = vrot.slane %v231_v14, 7 }
  0x2e   :  { %v307_v22 = vmul.f32 %v305_v15, %v580_v46  ;;  %v309_v23 = vmul.f32 %v305_v15, %v545_v9  ;;  %v306_v24 = vmul.f32 %v305_v15, %v302_v19  ;;  %v308_v17 = vmul.f32 0.0, %v305_v15 }
  0x2f   :  { %v254_v25 = vsel %vm154_vm1, %v249_v11, %v253_v21  ;;  %v311_v27 = vmul.f32 %v305_v15, %v540_v5  ;;  %v252_v28 = vsel %vm154_vm1, %v242_v63, %v251_v16  ;;  %v313_v33 = vmul.f32 %v305_v15, %v594_v0 }
  0x30   :  { %v325_v26 = vrot.slane %v307_v22, 6  ;;  %v322_v30 = vrot.slane %v306_v24, 6  ;;  %v323_v31 = vrot.slane %v308_v17, 6  ;;  %v312_v38 = vmul.f32 %v305_v15, %v303_v32 }
  0x31   :  { %130 = vrot.lane.b32.xlu1 %v108_v8, %s507_s25  ;;  %128 = vrot.lane.b32.xlu0 %v108_v8, %s507_s25  ;;  %v294_v8 = vrot.slane %v283_v7, 6  ;;  %v334_v39 = vrot.slane %v313_v33, 6  ;;  %v360_v40 = vmul.f32 %v358_v34, %v580_v46  ;;  %v361_v45 = vmul.f32 0.0, %v358_v34 }
  0x32   :  { %v332_v44 = vrot.slane %v312_v38, 6  ;;  %v364_v46 = vmul.f32 %v358_v34, %v540_v5  ;;  %v366_v53 = vmul.f32 %v358_v34, %v594_v0  ;;  %v365_v57 = vmul.f32 %v358_v34, %v303_v32 }
  0x33   :  { %v622_v18 = vsel %vm288_vm2, %v292_v61, %v294_v8  ;;  %v378_v48 = vrot.slane %v360_v40, 6  ;;  %v376_v52 = vrot.slane %v361_v45, 6  ;;  %v63_v15 = vstv %s699_s1  ;;  %s508_s1 = smov [#allocation9]  }
  0x34   :  { %v333_v50 = vsel %vm288_vm2, %v323_v31, %v332_v44  ;;  %v383_v56 = vrot.slane %v364_v46, 6  ;;  %v387_v59 = vrot.slane %v366_v53, 6  ;;  %v385_v60 = vrot.slane %v365_v57, 6  ;;  %s418_s6 = sshll.u32 %s508_s1, 4  ;;  %s419_s6 = int_to_ptr.vmem [resolvable:$true] %s418_s6 }
  0x35   :  { %204 = vrot.lane.b32.xlu1 %v193_v35, %s506_s2  ;;  %202 = vrot.lane.b32.xlu0 %v190_v36, %s506_s2  ;;  %v324_v36 = vsel %vm288_vm2, %v322_v30, %v323_v31  ;;  %s475_s7 = scalar_lea.vmem %s419_s6, 384  ;;  %p480_p6 = scmp.lt.s32.totalorder %s419_s6, %s419_s6 }
  0x36   :  { %v388_v61 = vsel %vm288_vm2, %v383_v56, %v387_v59  ;;  %v386_v62 = vsel %vm288_vm2, %v376_v52, %v385_v60  ;;  %p476_p5 = scmp.ne.s32.totalorder %s419_s6, %s475_s7  ;;  %p481_p7 = scmp.lt.s32.totalorder %s475_s7, %s475_s7 }
  0x38   :  { %p482_p8 = por %p481_p7, %p480_p6 }
  0x39   :  { %208 = vrot.lane.b32.xlu1 %v197_v37, %s506_s2  ;;  %206 = vrot.lane.b32.xlu0 %v189_v29, %s506_s2  ;;  %v326_v29 = vrot.slane %v309_v23, 6  ;;  %v330_v37 = vrot.slane %v311_v27, 6 }
  0x3a   :  { %p483_p9 = pnand %p482_p8, %p476_p5 }
  0x3b   :  { %v327_v35 = vsel %vm288_vm2, %v325_v26, %v326_v29  ;;  %v331_v43 = vsel %vm288_vm2, %v326_v29, %v330_v37  ;;  %v335_v47 = vsel %vm288_vm2, %v330_v37, %v334_v39 }
  0x3d   :  { %212 = vrot.lane.b32.xlu1 %v201_v41, %s506_s2  ;;  %210 = vrot.lane.b32.xlu0 %v199_v42, %s506_s2  ;;  %v362_v41 = vmul.f32 %v358_v34, %v545_v9  ;;  %v359_v42 = vmul.f32 %v358_v34, %v302_v19 }
  0x3f   :  { %v379_v49 = vrot.slane %v362_v41, 6  ;;  %v375_v51 = vrot.slane %v359_v42, 6 }
  0x41   :  { %257 = vrot.lane.b32.xlu1 %v246_v10, %s507_s25  ;;  %255 = vrot.lane.b32.xlu0 %v243_v13, %s507_s25  ;;  %v380_v54 = vsel %vm288_vm2, %v378_v48, %v379_v49  ;;  %v377_v55 = vsel %vm288_vm2, %v375_v51, %v376_v52  ;;  %v384_v58 = vsel %vm288_vm2, %v379_v49, %v383_v56  ;;  %v58_v10 = vstv %s57_s30 }
  0x42   :  { %v59_v11 = vmul.f32 %v58_v10, %v545_v9  ;;  %v60_v12 = vmul.f32 %v58_v10, %v540_v5 }
  0x44   :  { %v64_v19 = vadd.f32 %v63_v15, %v59_v11  ;;  %v65_v21 = vadd.f32 %v63_v15, %v60_v12 }
  0x45   :  { %261 = vrot.lane.b32.xlu1 %v250_v20, %s507_s25  ;;  %259 = vrot.lane.b32.xlu0 %v242_v63, %s507_s25  ;;  %v61_v20 = vmul.f32 0.0, %v58_v10 }
  0x47   :  { %v66_v17 = vadd.f32 %v63_v15, %v61_v20 }
  0x49   :  { %265 = vrot.lane.b32.xlu1 %v254_v25, %s507_s25  ;;  %263 = vrot.lane.b32.xlu0 %v252_v28, %s507_s25 }
  0x4d   :  { %338 = vrot.lane.b32.xlu1 %v327_v35, %s506_s2  ;;  %336 = vrot.lane.b32.xlu0 %v324_v36, %s506_s2 }
  0x51   :  { %342 = vrot.lane.b32.xlu1 %v331_v43, %s506_s2  ;;  %340 = vrot.lane.b32.xlu0 %v323_v31, %s506_s2 }
  0x55   :  { %346 = vrot.lane.b32.xlu1 %v335_v47, %s506_s2  ;;  %344 = vrot.lane.b32.xlu0 %v333_v50, %s506_s2 }
  0x59   :  { %391 = vrot.lane.b32.xlu1 %v380_v54, %s507_s25  ;;  %389 = vrot.lane.b32.xlu0 %v377_v55, %s507_s25 }
  0x5d   :  { %395 = vrot.lane.b32.xlu1 %v384_v58, %s507_s25  ;;  %393 = vrot.lane.b32.xlu0 %v376_v52, %s507_s25 }
  0x61   :  { %399 = vrot.lane.b32.xlu1 %v388_v61, %s507_s25  ;;  %397 = vrot.lane.b32.xlu0 %v386_v62, %s507_s25 }
  0x8f   :  { %v89_v63 = vpop.permute.xlu1 %88  ;;  %v85_v0 = vpop.permute.xlu0 %84 }
  0x93   :  { %v95_v7 = vpop.permute.xlu1 %94  ;;  %v93_v8 = vpop.permute.xlu0 %92 }
  0x94   :  { %v99_v29 = vsel %vm96_vm3, %v93_v8, %v95_v7 }
  0x95   :  { %v105_v33 = vadd.f32 %v99_v29, %v66_v17 }
  0x97   :  { %v91_v13 = vpop.permute.xlu1 %90  ;;  %v121_v14 = vpop.permute.xlu0 %120 }
  0x98   :  { %v98_v23 = vsel %vm96_vm3, %v89_v63, %v91_v13 }
  0x99   :  { %v104_v25 = vadd.f32 %v98_v23, %v65_v21 }
  0x9b   :  { %v123_v22 = vpop.permute.xlu1 %122  ;;  %v87_v16 = vpop.permute.xlu0 %86 }
  0x9c   :  { %v97_v24 = vsel %vm96_vm3, %v85_v0, %v87_v16  ;;  %v133_v5 = vsel %vm132_vm4, %v121_v14, %v123_v22 }
  0x9d   :  { %v103_v9 = vadd.f32 %v97_v24, %v64_v19 }
  0x9f   :  { %v139_v26 = vadd.f32 %v133_v5, %v103_v9  ;;  %v127_v27 = vpop.permute.xlu1 %126  ;;  %v125_v28 = vpop.permute.xlu0 %124 }
  0xa0   :  { %v134_v30 = vsel %vm132_vm4, %v125_v28, %v127_v27 }
  0xa1   :  { %v140_v31 = vadd.f32 %v134_v30, %v104_v25  ;;  %v165_v32 = vadd.f32 %v597_v1, %v139_v26 }
  0xa3   :  { %v131_v34 = vpop.permute.xlu1 %130  ;;  %v129_v35 = vpop.permute.xlu0 %128  ;;  %v166_v36 = vadd.f32 %v600_v2, %v140_v31 }
  0xa4   :  { %v135_v37 = vsel %vm132_vm4, %v129_v35, %v131_v34 }
  0xa5   :  { %v141_v38 = vadd.f32 %v135_v37, %v105_v33 }
  0xa7   :  { %v205_v39 = vpop.permute.xlu1 %204  ;;  %v203_v40 = vpop.permute.xlu0 %202  ;;  %v167_v41 = vadd.f32 %v603_v3, %v141_v38 }
  0xa8   :  { %v214_v47 = vsel %vm96_vm3, %v203_v40, %v205_v39 }
  0xa9   :  { %v220_v48 = vadd.f32 %v214_v47, %v165_v32 }
  0xab   :  { %v209_v42 = vpop.permute.xlu1 %208  ;;  %v207_v43 = vpop.permute.xlu0 %206 }
  0xac   :  { %v215_v50 = vsel %vm96_vm3, %v207_v43, %v209_v42 }
  0xad   :  { %v221_v52 = vadd.f32 %v215_v50, %v166_v36 }
  0xaf   :  { %v213_v44 = vpop.permute.xlu1 %212  ;;  %v211_v45 = vpop.permute.xlu0 %210 }
  0xb0   :  { %v216_v3 = vsel %vm96_vm3, %v211_v45, %v213_v44 }
  0xb1   :  { %v222_v57 = vadd.f32 %v216_v3, %v167_v41 }
  0xb3   :  { %v258_v1 = vpop.permute.xlu1 %257  ;;  %v256_v49 = vpop.permute.xlu0 %255 }
  0xb4   :  { %v267_v2 = vsel %vm132_vm4, %v256_v49, %v258_v1 }
  0xb5   :  { %v273_v51 = vadd.f32 %v267_v2, %v220_v48 }
  0xb7   :  { %v262_v46 = vpop.permute.xlu1 %261  ;;  %v260_v53 = vpop.permute.xlu0 %259  ;;  %v299_v54 = vadd.f32 %v606_v4, %v273_v51 }
  0xb8   :  { %v268_v55 = vsel %vm132_vm4, %v260_v53, %v262_v46 }
  0xb9   :  { %v274_v56 = vadd.f32 %v268_v55, %v221_v52 }
  0xbb   :  { %v266_v58 = vpop.permute.xlu1 %265  ;;  %v264_v59 = vpop.permute.xlu0 %263  ;;  %v300_v60 = vadd.f32 %v609_v6, %v274_v56 }
  0xbc   :  { %v269_v61 = vsel %vm132_vm4, %v264_v59, %v266_v58 }
  0xbd   :  { %v275_v62 = vadd.f32 %v269_v61, %v222_v57 }
  0xbf   :  { %v339_v63 = vpop.permute.xlu1 %338  ;;  %v337_v0 = vpop.permute.xlu0 %336  ;;  %v301_v7 = vadd.f32 %v622_v18, %v275_v62 }
  0xc0   :  { %v348_v12 = vsel %vm96_vm3, %v337_v0, %v339_v63 }
  0xc1   :  { %v354_v13 = vadd.f32 %v348_v12, %v299_v54 }
  0xc3   :  { %v343_v8 = vpop.permute.xlu1 %342  ;;  %v341_v10 = vpop.permute.xlu0 %340 }
  0xc4   :  { %v349_v19 = vsel %vm96_vm3, %v341_v10, %v343_v8 }
  0xc5   :  { %v355_v21 = vadd.f32 %v349_v19, %v300_v60 }
  0xc7   :  { %v347_v4 = vpop.permute.xlu1 %346  ;;  %v345_v11 = vpop.permute.xlu0 %344 }
  0xc8   :  { %v350_v18 = vsel %vm96_vm3, %v345_v11, %v347_v4 }
  0xc9   :  { %v356_v9 = vadd.f32 %v350_v18, %v301_v7 }
  0xcb   :  { %v392_v14 = vpop.permute.xlu1 %391  ;;  %v390_v15 = vpop.permute.xlu0 %389 }
  0xcc   :  { %v401_v6 = vsel %vm132_vm4, %v390_v15, %v392_v14 }
  0xcd   :  { %v407_v20 = vadd.f32 %v401_v6, %v354_v13 }
  0xcf   :  { %410 = vst [vmem:[#allocation9] sm:$0xff] %v407_v20  ;;  %v396_v22 = vpop.permute.xlu1 %395  ;;  %v394_v16 = vpop.permute.xlu0 %393 }
  0xd0   :  { %v402_v23 = vsel %vm132_vm4, %v394_v16, %v396_v22 }
  0xd1   :  { %v408_v24 = vadd.f32 %v402_v23, %v355_v21 }
  0xd3   :  { %411 = vst [vmem:[#allocation9 + $0x8] sm:$0xff] %v408_v24  ;;  %v400_v5 = vpop.permute.xlu1 %399  ;;  %v398_v17 = vpop.permute.xlu0 %397 }
  0xd4   :  { %v403_v25 = vsel %vm132_vm4, %v398_v17, %v400_v5 }
  0xd5   :  { %v409_v26 = vadd.f32 %v403_v25, %v356_v9 }
  0xd7   :  { %412 = vst [vmem:[#allocation9 + $0x10] sm:$0xff] %v409_v26 }
  0xd8   :  { %486 = shalt.err (!%p483_p9)
}
  0xd9   :  { %424 = dma.vmem_to_hbm [thread:$0]  %s419_s6, 384, %s701_s3, [#allocation6], %s503_s18, %s503_s18, %s504_s19  }
  0xda   :  { %499 = dma.done.wait [#allocation6], 384  }
  0xdb   :  { %500 = vsyncadd [#allocation6], 4294966912 }
  0xdc   :  { %428 = vsyncpa [#allocation5], 1 }
  0xdd   :  { %429 = vsyncpa [#allocation6], 1 }
  0xde   :  { %430 = vsyncpa [#allocation7], 1 }

</bundles_post_ra>
